<compile_context>
chip_gen: v7x
topology: tpu7x:2x2x1
jax: 0.10.0
libtpu: 0.0.40
codegen_flags: <defaults>
</compile_context>

<pallas_src>
import functools

import jax
import jax.numpy as jnp
from jax.experimental import pallas as pl
from jax.experimental.pallas import tpu as pltpu


def _round_up(n, m):
    return (n + m - 1) // m * m


# ----------------------------- Pallas kernel --------------------------------
def _make_dense_kernel(x_ref, w_ref, o_ref, p_ref, *, blk_b, cin_p, hw, w_dim, k):
    """make_dense for a block of BLK_B batch images.

    x_ref: (BLK_B, Cin_p, L)            zero-haloed, spatially-flattened input
    w_ref: (Cout_p, K*K*Cin_p)          conv weights, rows = out channel
    o_ref: (BLK_B, Cin_p+Cout_p, H*W)   fused concat output
    p_ref: VMEM scratch (K*K*Cin_p, BLK_B*H*W) patch (im2col) matrix
    """
    pad = (k - 1) // 2
    center = pad * (w_dim + 1)

    # Column-in-row index of each output pixel, computed ONCE per grid step as
    # a (1, hw) iota (not (Cin_p, hw)); masks hoisted out of the tap loop.
    col = jax.lax.broadcasted_iota(jnp.int32, (1, hw), 1)
    if (w_dim & (w_dim - 1)) == 0:
        col = col & (w_dim - 1)
    else:
        col = col % w_dim
    masks = {}
    for off in range(-pad, pad + 1):
        if off < 0:
            masks[off] = col >= -off
        elif off > 0:
            masks[off] = col < w_dim - off

    # Build the patch matrix: 9 shifted offset-loads per image straight from
    # the VMEM ref, with row-wrap columns masked to zero (vertical OOB is
    # covered by the zero halo). Masking stays in f32; cast only at the store.
    for b in range(blk_b):
        for ky in range(k):
            for kx in range(k):
                t = ky * k + kx
                start = ky * w_dim + kx
                tap = x_ref[b, :, start:start + hw]            # (Cin_p, H*W)
                off = kx - pad
                if off != 0:
                    tap = jnp.where(masks[off], tap, 0.0)
                p_ref[t * cin_p:(t + 1) * cin_p, b * hw:(b + 1) * hw] = (
                    tap.astype(p_ref.dtype))
        # Fused torch.cat((x, out), 1): exact identity passthrough channels.
        o_ref[b, :cin_p, :] = x_ref[b, :, center:center + hw]

    # One fat MXU matmul for the whole batch block (f32 accumulation).
    conv = jnp.dot(w_ref[...], p_ref[...], preferred_element_type=jnp.float32)
    conv = jnp.maximum(conv, 0.0)                              # bias=False + ReLU

    for b in range(blk_b):                                     # lane-aligned slices
        o_ref[b, cin_p:, :] = conv[:, b * hw:(b + 1) * hw].astype(o_ref.dtype)


# ------------------------------- wrapper -------------------------------------
def make_dense_pallas(x, w, compute_dtype=jnp.bfloat16, blk_b=None):
    """x: (B, Cin, H, W) NCHW; w: (Cout, Cin, K, K) (PyTorch OIHW, bias=False).

    Returns concat([x, relu(conv2d_same(x, w))], axis=1) -> (B, Cin+Cout, H, W).
    compute_dtype controls the MXU path (bf16 default); accumulation is f32 and
    the identity channels are passed through exactly. Use jnp.float32 for
    bit-tight numerics.
    """
    B, cin, H, W = x.shape
    cout, _, K, _ = w.shape
    assert K % 2 == 1, "make_dense assumes odd kernel_size (symmetric SAME pad)"
    pad = (K - 1) // 2
    hw = H * W
    cin_p = _round_up(cin, 8)
    cout_p = _round_up(cout, 8)
    c_total = cin_p + cout_p

    # Batch block: biggest divisor of B up to a VMEM-friendly cap. (On v7x one
    # may prefer >=2 grid steps so both TensorCores get work; pass blk_b
    # explicitly to control that.)
    if blk_b is None:
        blk_b_max = 8
        blk_b = max(d for d in range(1, min(B, blk_b_max) + 1) if B % d == 0)
    assert B % blk_b == 0, (B, blk_b)

    halo = pad * (W + 1)                       # only 2*pad rows of flat halo
    L = hw + 2 * halo

    # Single fused pad: channel pad (to sublane multiple) + flat spatial halo.
    xf = x.reshape(B, cin, hw)
    xf = jnp.pad(xf, ((0, 0), (0, cin_p - cin), (halo, halo)))

    # Weights -> (Cout_p, K*K*Cin_p), rows ordered (ky, kx, ci) to match p_ref.
    w2 = jnp.transpose(w, (0, 2, 3, 1))                        # (Cout, K, K, Cin)
    w2 = jnp.pad(w2, ((0, cout_p - cout), (0, 0), (0, 0), (0, cin_p - cin)))
    w2 = w2.reshape(cout_p, K * K * cin_p).astype(compute_dtype)

    # Explicit scoped-VMEM budget sized from the actual block footprint
    # (v5e default is only 16 MiB; v7x physical VMEM is 64 MiB -> cap).
    itemsize = jnp.dtype(x.dtype).itemsize
    csize = jnp.dtype(compute_dtype).itemsize
    in_blk = blk_b * cin_p * L * itemsize
    out_blk = blk_b * c_total * hw * itemsize
    w_bytes = cout_p * K * K * cin_p * csize
    patch_bytes = K * K * cin_p * blk_b * hw * csize
    vmem_est = 2 * in_blk + 2 * out_blk + 2 * w_bytes + patch_bytes
    vmem_limit = min(max(int(1.5 * vmem_est) + (1 << 20), 16 << 20), 48 << 20)

    kernel = functools.partial(
        _make_dense_kernel, blk_b=blk_b, cin_p=cin_p, hw=hw, w_dim=W, k=K)

    y = pl.pallas_call(
        kernel,
        out_shape=jax.ShapeDtypeStruct((B, c_total, hw), x.dtype),
        grid=(B // blk_b,),
        in_specs=[
            pl.BlockSpec((blk_b, cin_p, L), lambda i: (i, 0, 0)),
            pl.BlockSpec((cout_p, K * K * cin_p), lambda i: (0, 0)),
        ],
        out_specs=pl.BlockSpec((blk_b, c_total, hw), lambda i: (i, 0, 0)),
        scratch_shapes=[pltpu.VMEM((K * K * cin_p, blk_b * hw), compute_dtype)],
        compiler_params=pltpu.CompilerParams(
            dimension_semantics=("parallel",),
            vmem_limit_bytes=vmem_limit),
    )(xf, w2)

    y = y.reshape(B, c_total, H, W)
    if cin_p == cin and cout_p == cout:
        return y                                               # fully fused path
    # Only taken when channel counts were padded.
    return jnp.concatenate([y[:, :cin], y[:, cin_p:cin_p + cout]], axis=1)


# ------------------------------ reference ------------------------------------
def make_dense_ref(x, w):
    y = jax.lax.conv_general_dilated(
        x, w, window_strides=(1, 1), padding="SAME",
        dimension_numbers=("NCHW", "OIHW", "NCHW"),
        precision=jax.lax.Precision.HIGHEST)
    y = jnp.maximum(y, 0.0)
    return jnp.concatenate([x, y], axis=1)


# ---------------------------------- main --------------------------------------
if __name__ == "__main__":
    B, nChannels, growthRate, H, W = 2, 16, 16, 16, 16

    key = jax.random.PRNGKey(0)
    kx_, kw_ = jax.random.split(key)
    x = jax.random.normal(kx_, (B, nChannels, H, W), jnp.float32)
    std = (2.0 / (3 * 3 * nChannels)) ** 0.5
    w = std * jax.random.normal(kw_, (growthRate, nChannels, 3, 3), jnp.float32)

    ref = make_dense_ref(x, w)

    # Default (bf16 compute, f32 accumulation) path.
    fwd_bf16 = jax.jit(make_dense_pallas)
    out_bf16 = jax.block_until_ready(fwd_bf16(x, w))
    assert out_bf16.shape == (B, nChannels + growthRate, H, W), out_bf16.shape
    rel_bf16 = jnp.max(jnp.abs(out_bf16 - ref)) / (jnp.max(jnp.abs(ref)) + 1e-12)
    assert float(rel_bf16) < 3e-2, f"bf16 path mismatch: rel max err {rel_bf16}"
    # Identity (concat) channels must be bit-exact even on the bf16 path.
    assert bool(jnp.all(out_bf16[:, :nChannels] == x)), "identity channels not exact"

    # f32 compute path: tight numerical check.
    fwd_f32 = jax.jit(functools.partial(make_dense_pallas,
                                        compute_dtype=jnp.float32))
    out_f32 = jax.block_until_ready(fwd_f32(x, w))
    rel_f32 = jnp.max(jnp.abs(out_f32 - ref)) / (jnp.max(jnp.abs(ref)) + 1e-12)
    assert float(rel_f32) < 1e-4, f"f32 path mismatch: rel max err {rel_f32}"

    print("KERNEL_OK")
</pallas_src>

<mosaic_0001>
module attributes {stable_mosaic.version = 11 : i64} {
  func.func @_make_dense_kernel(%arg0: i32, %arg1: memref<2x16x290xf32, #tpu.memory_space<vmem>>, %arg2: memref<16x144xbf16, #tpu.memory_space<vmem>>, %arg3: memref<2x32x256xf32, #tpu.memory_space<vmem>>, %arg4: memref<144x512xbf16, #tpu.memory_space<vmem>>) attributes {dimension_semantics = [#tpu.dimension_semantics<parallel>], iteration_bounds = array<i64: 1>, scalar_prefetch = 0 : i64, scratch_operands = 1 : i64, tpu.core_type = #tpu.core_type<tc>, window_params = [{transform_indices = @transform_0, window_bounds = array<i64: 2, 16, 290>}, {pipeline_mode = #tpu.pipeline_mode<synchronous>, transform_indices = @transform_1, window_bounds = array<i64: 16, 144>}, {transform_indices = @transform_2, window_bounds = array<i64: 2, 32, 256>}]} {
    %0 = tpu.iota {dimensions = array<i32: 1>} : vector<1x256xi32>
    %c15_i32 = arith.constant 15 : i32
    %1 = vector.broadcast %c15_i32 : i32 to vector<1x256xi32>
    %2 = arith.andi %0, %1 : vector<1x256xi32>
    %c1_i32 = arith.constant 1 : i32
    %3 = vector.broadcast %c1_i32 : i32 to vector<1x256xi32>
    %4 = arith.cmpi sge, %2, %3 : vector<1x256xi32>
    %c15_i32_0 = arith.constant 15 : i32
    %5 = vector.broadcast %c15_i32_0 : i32 to vector<1x256xi32>
    %6 = arith.cmpi slt, %2, %5 : vector<1x256xi32>
    %c0 = arith.constant 0 : index
    %c0_1 = arith.constant 0 : index
    %c0_2 = arith.constant 0 : index
    %7 = vector.load %arg1[%c0, %c0_1, %c0_2] : memref<2x16x290xf32, #tpu.memory_space<vmem>>, vector<1x16x256xf32>
    %8 = vector.shape_cast %7 : vector<1x16x256xf32> to vector<16x256xf32>
    %cst = arith.constant 0.000000e+00 : f32
    %9 = vector.shape_cast %4 : vector<1x256xi1> to vector<1x256xi1>
    %10 = vector.broadcast %9 : vector<1x256xi1> to vector<16x256xi1>
    %11 = vector.broadcast %cst : f32 to vector<16x256xf32>
    %12 = arith.select %10, %8, %11 : vector<16x256xi1>, vector<16x256xf32>
    %13 = arith.truncf %12 : vector<16x256xf32> to vector<16x256xbf16>
    %c0_3 = arith.constant 0 : index
    %c0_4 = arith.constant 0 : index
    %14 = vector.load %arg4[%c0_3, %c0_4] : memref<144x512xbf16, #tpu.memory_space<vmem>>, vector<16x256xbf16>
    tpu.vector_store %arg4[%c0_3, %c0_4], %13 {strides = array<i32>} : memref<144x512xbf16, #tpu.memory_space<vmem>>, vector<16x256xbf16>,
    %c0_5 = arith.constant 0 : index
    %c0_6 = arith.constant 0 : index
    %c1 = arith.constant 1 : index
    %15 = vector.load %arg1[%c0_5, %c0_6, %c1] : memref<2x16x290xf32, #tpu.memory_space<vmem>>, vector<1x16x256xf32>
    %16 = vector.shape_cast %15 : vector<1x16x256xf32> to vector<16x256xf32>
    %17 = arith.truncf %16 : vector<16x256xf32> to vector<16x256xbf16>
    %c16 = arith.constant 16 : index
    %c0_7 = arith.constant 0 : index
    %18 = vector.load %arg4[%c16, %c0_7] : memref<144x512xbf16, #tpu.memory_space<vmem>>, vector<16x256xbf16>
    tpu.vector_store %arg4[%c16, %c0_7], %17 {strides = array<i32>} : memref<144x512xbf16, #tpu.memory_space<vmem>>, vector<16x256xbf16>,
    %c0_8 = arith.constant 0 : index
    %c0_9 = arith.constant 0 : index
    %c2 = arith.constant 2 : index
    %19 = vector.load %arg1[%c0_8, %c0_9, %c2] : memref<2x16x290xf32, #tpu.memory_space<vmem>>, vector<1x16x256xf32>
    %20 = vector.shape_cast %19 : vector<1x16x256xf32> to vector<16x256xf32>
    %cst_10 = arith.constant 0.000000e+00 : f32
    %21 = vector.shape_cast %6 : vector<1x256xi1> to vector<1x256xi1>
    %22 = vector.broadcast %21 : vector<1x256xi1> to vector<16x256xi1>
    %23 = vector.broadcast %cst_10 : f32 to vector<16x256xf32>
    %24 = arith.select %22, %20, %23 : vector<16x256xi1>, vector<16x256xf32>
    %25 = arith.truncf %24 : vector<16x256xf32> to vector<16x256xbf16>
    %c32 = arith.constant 32 : index
    %c0_11 = arith.constant 0 : index
    %26 = vector.load %arg4[%c32, %c0_11] : memref<144x512xbf16, #tpu.memory_space<vmem>>, vector<16x256xbf16>
    tpu.vector_store %arg4[%c32, %c0_11], %25 {strides = array<i32>} : memref<144x512xbf16, #tpu.memory_space<vmem>>, vector<16x256xbf16>,
    %c0_12 = arith.constant 0 : index
    %c0_13 = arith.constant 0 : index
    %c16_14 = arith.constant 16 : index
    %27 = vector.load %arg1[%c0_12, %c0_13, %c16_14] : memref<2x16x290xf32, #tpu.memory_space<vmem>>, vector<1x16x256xf32>
    %28 = vector.shape_cast %27 : vector<1x16x256xf32> to vector<16x256xf32>
    %cst_15 = arith.constant 0.000000e+00 : f32
    %29 = vector.shape_cast %4 : vector<1x256xi1> to vector<1x256xi1>
    %30 = vector.broadcast %29 : vector<1x256xi1> to vector<16x256xi1>
    %31 = vector.broadcast %cst_15 : f32 to vector<16x256xf32>
    %32 = arith.select %30, %28, %31 : vector<16x256xi1>, vector<16x256xf32>
    %33 = arith.truncf %32 : vector<16x256xf32> to vector<16x256xbf16>
    %c48 = arith.constant 48 : index
    %c0_16 = arith.constant 0 : index
    %34 = vector.load %arg4[%c48, %c0_16] : memref<144x512xbf16, #tpu.memory_space<vmem>>, vector<16x256xbf16>
    tpu.vector_store %arg4[%c48, %c0_16], %33 {strides = array<i32>} : memref<144x512xbf16, #tpu.memory_space<vmem>>, vector<16x256xbf16>,
    %c0_17 = arith.constant 0 : index
    %c0_18 = arith.constant 0 : index
    %c17 = arith.constant 17 : index
    %35 = vector.load %arg1[%c0_17, %c0_18, %c17] : memref<2x16x290xf32, #tpu.memory_space<vmem>>, vector<1x16x256xf32>
    %36 = vector.shape_cast %35 : vector<1x16x256xf32> to vector<16x256xf32>
    %37 = arith.truncf %36 : vector<16x256xf32> to vector<16x256xbf16>
    %c64 = arith.constant 64 : index
    %c0_19 = arith.constant 0 : index
    %38 = vector.load %arg4[%c64, %c0_19] : memref<144x512xbf16, #tpu.memory_space<vmem>>, vector<16x256xbf16>
    tpu.vector_store %arg4[%c64, %c0_19], %37 {strides = array<i32>} : memref<144x512xbf16, #tpu.memory_space<vmem>>, vector<16x256xbf16>,
    %c0_20 = arith.constant 0 : index
    %c0_21 = arith.constant 0 : index
    %c18 = arith.constant 18 : index
    %39 = vector.load %arg1[%c0_20, %c0_21, %c18] : memref<2x16x290xf32, #tpu.memory_space<vmem>>, vector<1x16x256xf32>
    %40 = vector.shape_cast %39 : vector<1x16x256xf32> to vector<16x256xf32>
    %cst_22 = arith.constant 0.000000e+00 : f32
    %41 = vector.shape_cast %6 : vector<1x256xi1> to vector<1x256xi1>
    %42 = vector.broadcast %41 : vector<1x256xi1> to vector<16x256xi1>
    %43 = vector.broadcast %cst_22 : f32 to vector<16x256xf32>
    %44 = arith.select %42, %40, %43 : vector<16x256xi1>, vector<16x256xf32>
    %45 = arith.truncf %44 : vector<16x256xf32> to vector<16x256xbf16>
    %c80 = arith.constant 80 : index
    %c0_23 = arith.constant 0 : index
    %46 = vector.load %arg4[%c80, %c0_23] : memref<144x512xbf16, #tpu.memory_space<vmem>>, vector<16x256xbf16>
    tpu.vector_store %arg4[%c80, %c0_23], %45 {strides = array<i32>} : memref<144x512xbf16, #tpu.memory_space<vmem>>, vector<16x256xbf16>,
    %c0_24 = arith.constant 0 : index
    %c0_25 = arith.constant 0 : index
    %c32_26 = arith.constant 32 : index
    %47 = vector.load %arg1[%c0_24, %c0_25, %c32_26] : memref<2x16x290xf32, #tpu.memory_space<vmem>>, vector<1x16x256xf32>
    %48 = vector.shape_cast %47 : vector<1x16x256xf32> to vector<16x256xf32>
    %cst_27 = arith.constant 0.000000e+00 : f32
    %49 = vector.shape_cast %4 : vector<1x256xi1> to vector<1x256xi1>
    %50 = vector.broadcast %49 : vector<1x256xi1> to vector<16x256xi1>
    %51 = vector.broadcast %cst_27 : f32 to vector<16x256xf32>
    %52 = arith.select %50, %48, %51 : vector<16x256xi1>, vector<16x256xf32>
    %53 = arith.truncf %52 : vector<16x256xf32> to vector<16x256xbf16>
    %c96 = arith.constant 96 : index
    %c0_28 = arith.constant 0 : index
    %54 = vector.load %arg4[%c96, %c0_28] : memref<144x512xbf16, #tpu.memory_space<vmem>>, vector<16x256xbf16>
    tpu.vector_store %arg4[%c96, %c0_28], %53 {strides = array<i32>} : memref<144x512xbf16, #tpu.memory_space<vmem>>, vector<16x256xbf16>,
    %c0_29 = arith.constant 0 : index
    %c0_30 = arith.constant 0 : index
    %c33 = arith.constant 33 : index
    %55 = vector.load %arg1[%c0_29, %c0_30, %c33] : memref<2x16x290xf32, #tpu.memory_space<vmem>>, vector<1x16x256xf32>
    %56 = vector.shape_cast %55 : vector<1x16x256xf32> to vector<16x256xf32>
    %57 = arith.truncf %56 : vector<16x256xf32> to vector<16x256xbf16>
    %c112 = arith.constant 112 : index
    %c0_31 = arith.constant 0 : index
    %58 = vector.load %arg4[%c112, %c0_31] : memref<144x512xbf16, #tpu.memory_space<vmem>>, vector<16x256xbf16>
    tpu.vector_store %arg4[%c112, %c0_31], %57 {strides = array<i32>} : memref<144x512xbf16, #tpu.memory_space<vmem>>, vector<16x256xbf16>,
    %c0_32 = arith.constant 0 : index
    %c0_33 = arith.constant 0 : index
    %c34 = arith.constant 34 : index
    %59 = vector.load %arg1[%c0_32, %c0_33, %c34] : memref<2x16x290xf32, #tpu.memory_space<vmem>>, vector<1x16x256xf32>
    %60 = vector.shape_cast %59 : vector<1x16x256xf32> to vector<16x256xf32>
    %cst_34 = arith.constant 0.000000e+00 : f32
    %61 = vector.shape_cast %6 : vector<1x256xi1> to vector<1x256xi1>
    %62 = vector.broadcast %61 : vector<1x256xi1> to vector<16x256xi1>
    %63 = vector.broadcast %cst_34 : f32 to vector<16x256xf32>
    %64 = arith.select %62, %60, %63 : vector<16x256xi1>, vector<16x256xf32>
    %65 = arith.truncf %64 : vector<16x256xf32> to vector<16x256xbf16>
    %c128 = arith.constant 128 : index
    %c0_35 = arith.constant 0 : index
    %66 = vector.load %arg4[%c128, %c0_35] : memref<144x512xbf16, #tpu.memory_space<vmem>>, vector<16x256xbf16>
    tpu.vector_store %arg4[%c128, %c0_35], %65 {strides = array<i32>} : memref<144x512xbf16, #tpu.memory_space<vmem>>, vector<16x256xbf16>,
    %c0_36 = arith.constant 0 : index
    %c0_37 = arith.constant 0 : index
    %c17_38 = arith.constant 17 : index
    %67 = vector.load %arg1[%c0_36, %c0_37, %c17_38] : memref<2x16x290xf32, #tpu.memory_space<vmem>>, vector<1x16x256xf32>
    %68 = vector.shape_cast %67 : vector<1x16x256xf32> to vector<16x256xf32>
    %c0_39 = arith.constant 0 : index
    %c0_40 = arith.constant 0 : index
    %c0_41 = arith.constant 0 : index
    %69 = vector.load %arg3[%c0_39, %c0_40, %c0_41] : memref<2x32x256xf32, #tpu.memory_space<vmem>>, vector<1x16x256xf32>
    %70 = vector.shape_cast %69 : vector<1x16x256xf32> to vector<16x256xf32>
    %71 = vector.shape_cast %68 : vector<16x256xf32> to vector<1x16x256xf32>
    tpu.vector_store %arg3[%c0_39, %c0_40, %c0_41], %71 {strides = array<i32>} : memref<2x32x256xf32, #tpu.memory_space<vmem>>, vector<1x16x256xf32>,
    %c1_42 = arith.constant 1 : index
    %c0_43 = arith.constant 0 : index
    %c0_44 = arith.constant 0 : index
    %72 = vector.load %arg1[%c1_42, %c0_43, %c0_44] : memref<2x16x290xf32, #tpu.memory_space<vmem>>, vector<1x16x256xf32>
    %73 = vector.shape_cast %72 : vector<1x16x256xf32> to vector<16x256xf32>
    %cst_45 = arith.constant 0.000000e+00 : f32
    %74 = vector.shape_cast %4 : vector<1x256xi1> to vector<1x256xi1>
    %75 = vector.broadcast %74 : vector<1x256xi1> to vector<16x256xi1>
    %76 = vector.broadcast %cst_45 : f32 to vector<16x256xf32>
    %77 = arith.select %75, %73, %76 : vector<16x256xi1>, vector<16x256xf32>
    %78 = arith.truncf %77 : vector<16x256xf32> to vector<16x256xbf16>
    %c0_46 = arith.constant 0 : index
    %c256 = arith.constant 256 : index
    %79 = vector.load %arg4[%c0_46, %c256] : memref<144x512xbf16, #tpu.memory_space<vmem>>, vector<16x256xbf16>
    tpu.vector_store %arg4[%c0_46, %c256], %78 {strides = array<i32>} : memref<144x512xbf16, #tpu.memory_space<vmem>>, vector<16x256xbf16>,
    %c1_47 = arith.constant 1 : index
    %c0_48 = arith.constant 0 : index
    %c1_49 = arith.constant 1 : index
    %80 = vector.load %arg1[%c1_47, %c0_48, %c1_49] : memref<2x16x290xf32, #tpu.memory_space<vmem>>, vector<1x16x256xf32>
    %81 = vector.shape_cast %80 : vector<1x16x256xf32> to vector<16x256xf32>
    %82 = arith.truncf %81 : vector<16x256xf32> to vector<16x256xbf16>
    %c16_50 = arith.constant 16 : index
    %c256_51 = arith.constant 256 : index
    %83 = vector.load %arg4[%c16_50, %c256_51] : memref<144x512xbf16, #tpu.memory_space<vmem>>, vector<16x256xbf16>
    tpu.vector_store %arg4[%c16_50, %c256_51], %82 {strides = array<i32>} : memref<144x512xbf16, #tpu.memory_space<vmem>>, vector<16x256xbf16>,
    %c1_52 = arith.constant 1 : index
    %c0_53 = arith.constant 0 : index
    %c2_54 = arith.constant 2 : index
    %84 = vector.load %arg1[%c1_52, %c0_53, %c2_54] : memref<2x16x290xf32, #tpu.memory_space<vmem>>, vector<1x16x256xf32>
    %85 = vector.shape_cast %84 : vector<1x16x256xf32> to vector<16x256xf32>
    %cst_55 = arith.constant 0.000000e+00 : f32
    %86 = vector.shape_cast %6 : vector<1x256xi1> to vector<1x256xi1>
    %87 = vector.broadcast %86 : vector<1x256xi1> to vector<16x256xi1>
    %88 = vector.broadcast %cst_55 : f32 to vector<16x256xf32>
    %89 = arith.select %87, %85, %88 : vector<16x256xi1>, vector<16x256xf32>
    %90 = arith.truncf %89 : vector<16x256xf32> to vector<16x256xbf16>
    %c32_56 = arith.constant 32 : index
    %c256_57 = arith.constant 256 : index
    %91 = vector.load %arg4[%c32_56, %c256_57] : memref<144x512xbf16, #tpu.memory_space<vmem>>, vector<16x256xbf16>
    tpu.vector_store %arg4[%c32_56, %c256_57], %90 {strides = array<i32>} : memref<144x512xbf16, #tpu.memory_space<vmem>>, vector<16x256xbf16>,
    %c1_58 = arith.constant 1 : index
    %c0_59 = arith.constant 0 : index
    %c16_60 = arith.constant 16 : index
    %92 = vector.load %arg1[%c1_58, %c0_59, %c16_60] : memref<2x16x290xf32, #tpu.memory_space<vmem>>, vector<1x16x256xf32>
    %93 = vector.shape_cast %92 : vector<1x16x256xf32> to vector<16x256xf32>
    %cst_61 = arith.constant 0.000000e+00 : f32
    %94 = vector.shape_cast %4 : vector<1x256xi1> to vector<1x256xi1>
    %95 = vector.broadcast %94 : vector<1x256xi1> to vector<16x256xi1>
    %96 = vector.broadcast %cst_61 : f32 to vector<16x256xf32>
    %97 = arith.select %95, %93, %96 : vector<16x256xi1>, vector<16x256xf32>
    %98 = arith.truncf %97 : vector<16x256xf32> to vector<16x256xbf16>
    %c48_62 = arith.constant 48 : index
    %c256_63 = arith.constant 256 : index
    %99 = vector.load %arg4[%c48_62, %c256_63] : memref<144x512xbf16, #tpu.memory_space<vmem>>, vector<16x256xbf16>
    tpu.vector_store %arg4[%c48_62, %c256_63], %98 {strides = array<i32>} : memref<144x512xbf16, #tpu.memory_space<vmem>>, vector<16x256xbf16>,
    %c1_64 = arith.constant 1 : index
    %c0_65 = arith.constant 0 : index
    %c17_66 = arith.constant 17 : index
    %100 = vector.load %arg1[%c1_64, %c0_65, %c17_66] : memref<2x16x290xf32, #tpu.memory_space<vmem>>, vector<1x16x256xf32>
    %101 = vector.shape_cast %100 : vector<1x16x256xf32> to vector<16x256xf32>
    %102 = arith.truncf %101 : vector<16x256xf32> to vector<16x256xbf16>
    %c64_67 = arith.constant 64 : index
    %c256_68 = arith.constant 256 : index
    %103 = vector.load %arg4[%c64_67, %c256_68] : memref<144x512xbf16, #tpu.memory_space<vmem>>, vector<16x256xbf16>
    tpu.vector_store %arg4[%c64_67, %c256_68], %102 {strides = array<i32>} : memref<144x512xbf16, #tpu.memory_space<vmem>>, vector<16x256xbf16>,
    %c1_69 = arith.constant 1 : index
    %c0_70 = arith.constant 0 : index
    %c18_71 = arith.constant 18 : index
    %104 = vector.load %arg1[%c1_69, %c0_70, %c18_71] : memref<2x16x290xf32, #tpu.memory_space<vmem>>, vector<1x16x256xf32>
    %105 = vector.shape_cast %104 : vector<1x16x256xf32> to vector<16x256xf32>
    %cst_72 = arith.constant 0.000000e+00 : f32
    %106 = vector.shape_cast %6 : vector<1x256xi1> to vector<1x256xi1>
    %107 = vector.broadcast %106 : vector<1x256xi1> to vector<16x256xi1>
    %108 = vector.broadcast %cst_72 : f32 to vector<16x256xf32>
    %109 = arith.select %107, %105, %108 : vector<16x256xi1>, vector<16x256xf32>
    %110 = arith.truncf %109 : vector<16x256xf32> to vector<16x256xbf16>
    %c80_73 = arith.constant 80 : index
    %c256_74 = arith.constant 256 : index
    %111 = vector.load %arg4[%c80_73, %c256_74] : memref<144x512xbf16, #tpu.memory_space<vmem>>, vector<16x256xbf16>
    tpu.vector_store %arg4[%c80_73, %c256_74], %110 {strides = array<i32>} : memref<144x512xbf16, #tpu.memory_space<vmem>>, vector<16x256xbf16>,
    %c1_75 = arith.constant 1 : index
    %c0_76 = arith.constant 0 : index
    %c32_77 = arith.constant 32 : index
    %112 = vector.load %arg1[%c1_75, %c0_76, %c32_77] : memref<2x16x290xf32, #tpu.memory_space<vmem>>, vector<1x16x256xf32>
    %113 = vector.shape_cast %112 : vector<1x16x256xf32> to vector<16x256xf32>
    %cst_78 = arith.constant 0.000000e+00 : f32
    %114 = vector.shape_cast %4 : vector<1x256xi1> to vector<1x256xi1>
    %115 = vector.broadcast %114 : vector<1x256xi1> to vector<16x256xi1>
    %116 = vector.broadcast %cst_78 : f32 to vector<16x256xf32>
    %117 = arith.select %115, %113, %116 : vector<16x256xi1>, vector<16x256xf32>
    %118 = arith.truncf %117 : vector<16x256xf32> to vector<16x256xbf16>
    %c96_79 = arith.constant 96 : index
    %c256_80 = arith.constant 256 : index
    %119 = vector.load %arg4[%c96_79, %c256_80] : memref<144x512xbf16, #tpu.memory_space<vmem>>, vector<16x256xbf16>
    tpu.vector_store %arg4[%c96_79, %c256_80], %118 {strides = array<i32>} : memref<144x512xbf16, #tpu.memory_space<vmem>>, vector<16x256xbf16>,
    %c1_81 = arith.constant 1 : index
    %c0_82 = arith.constant 0 : index
    %c33_83 = arith.constant 33 : index
    %120 = vector.load %arg1[%c1_81, %c0_82, %c33_83] : memref<2x16x290xf32, #tpu.memory_space<vmem>>, vector<1x16x256xf32>
    %121 = vector.shape_cast %120 : vector<1x16x256xf32> to vector<16x256xf32>
    %122 = arith.truncf %121 : vector<16x256xf32> to vector<16x256xbf16>
    %c112_84 = arith.constant 112 : index
    %c256_85 = arith.constant 256 : index
    %123 = vector.load %arg4[%c112_84, %c256_85] : memref<144x512xbf16, #tpu.memory_space<vmem>>, vector<16x256xbf16>
    tpu.vector_store %arg4[%c112_84, %c256_85], %122 {strides = array<i32>} : memref<144x512xbf16, #tpu.memory_space<vmem>>, vector<16x256xbf16>,
    %c1_86 = arith.constant 1 : index
    %c0_87 = arith.constant 0 : index
    %c34_88 = arith.constant 34 : index
    %124 = vector.load %arg1[%c1_86, %c0_87, %c34_88] : memref<2x16x290xf32, #tpu.memory_space<vmem>>, vector<1x16x256xf32>
    %125 = vector.shape_cast %124 : vector<1x16x256xf32> to vector<16x256xf32>
    %cst_89 = arith.constant 0.000000e+00 : f32
    %126 = vector.shape_cast %6 : vector<1x256xi1> to vector<1x256xi1>
    %127 = vector.broadcast %126 : vector<1x256xi1> to vector<16x256xi1>
    %128 = vector.broadcast %cst_89 : f32 to vector<16x256xf32>
    %129 = arith.select %127, %125, %128 : vector<16x256xi1>, vector<16x256xf32>
    %130 = arith.truncf %129 : vector<16x256xf32> to vector<16x256xbf16>
    %c128_90 = arith.constant 128 : index
    %c256_91 = arith.constant 256 : index
    %131 = vector.load %arg4[%c128_90, %c256_91] : memref<144x512xbf16, #tpu.memory_space<vmem>>, vector<16x256xbf16>
    tpu.vector_store %arg4[%c128_90, %c256_91], %130 {strides = array<i32>} : memref<144x512xbf16, #tpu.memory_space<vmem>>, vector<16x256xbf16>,
    %c1_92 = arith.constant 1 : index
    %c0_93 = arith.constant 0 : index
    %c17_94 = arith.constant 17 : index
    %132 = vector.load %arg1[%c1_92, %c0_93, %c17_94] : memref<2x16x290xf32, #tpu.memory_space<vmem>>, vector<1x16x256xf32>
    %133 = vector.shape_cast %132 : vector<1x16x256xf32> to vector<16x256xf32>
    %c1_95 = arith.constant 1 : index
    %c0_96 = arith.constant 0 : index
    %c0_97 = arith.constant 0 : index
    %134 = vector.load %arg3[%c1_95, %c0_96, %c0_97] : memref<2x32x256xf32, #tpu.memory_space<vmem>>, vector<1x16x256xf32>
    %135 = vector.shape_cast %134 : vector<1x16x256xf32> to vector<16x256xf32>
    %136 = vector.shape_cast %133 : vector<16x256xf32> to vector<1x16x256xf32>
    tpu.vector_store %arg3[%c1_95, %c0_96, %c0_97], %136 {strides = array<i32>} : memref<2x32x256xf32, #tpu.memory_space<vmem>>, vector<1x16x256xf32>,
    %c0_98 = arith.constant 0 : index
    %c0_99 = arith.constant 0 : index
    %137 = vector.load %arg2[%c0_98, %c0_99] : memref<16x144xbf16, #tpu.memory_space<vmem>>, vector<16x144xbf16>
    %c0_100 = arith.constant 0 : index
    %c0_101 = arith.constant 0 : index
    %138 = vector.load %arg4[%c0_100, %c0_101] : memref<144x512xbf16, #tpu.memory_space<vmem>>, vector<144x512xbf16>
    %cst_102 = arith.constant dense<0.000000e+00> : vector<16x512xf32>
    %139 = tpu.matmul %137, %138, %cst_102 {dimension_numbers = #tpu.dot_dimension_numbers<[1], [0], [0], [1], [0, 0, 1, 1], [], []>} : vector<16x144xbf16>, vector<144x512xbf16>, vector<16x512xf32> -> vector<16x512xf32>
    %cst_103 = arith.constant 0.000000e+00 : f32
    %140 = vector.broadcast %cst_103 : f32 to vector<16x512xf32>
    %141 = arith.maximumf %139, %140 : vector<16x512xf32>
    %142 = vector.extract_strided_slice %141 {offsets = [0, 0], sizes = [16, 256], strides = [1, 1]} : vector<16x512xf32> to vector<16x256xf32>
    %c0_104 = arith.constant 0 : index
    %c16_105 = arith.constant 16 : index
    %c0_106 = arith.constant 0 : index
    %143 = vector.load %arg3[%c0_104, %c16_105, %c0_106] : memref<2x32x256xf32, #tpu.memory_space<vmem>>, vector<1x16x256xf32>
    %144 = vector.shape_cast %143 : vector<1x16x256xf32> to vector<16x256xf32>
    %145 = vector.shape_cast %142 : vector<16x256xf32> to vector<1x16x256xf32>
    tpu.vector_store %arg3[%c0_104, %c16_105, %c0_106], %145 {strides = array<i32>} : memref<2x32x256xf32, #tpu.memory_space<vmem>>, vector<1x16x256xf32>,
    %146 = vector.extract_strided_slice %141 {offsets = [0, 256], sizes = [16, 256], strides = [1, 1]} : vector<16x512xf32> to vector<16x256xf32>
    %c1_107 = arith.constant 1 : index
    %c16_108 = arith.constant 16 : index
    %c0_109 = arith.constant 0 : index
    %147 = vector.load %arg3[%c1_107, %c16_108, %c0_109] : memref<2x32x256xf32, #tpu.memory_space<vmem>>, vector<1x16x256xf32>
    %148 = vector.shape_cast %147 : vector<1x16x256xf32> to vector<16x256xf32>
    %149 = vector.shape_cast %146 : vector<16x256xf32> to vector<1x16x256xf32>
    tpu.vector_store %arg3[%c1_107, %c16_108, %c0_109], %149 {strides = array<i32>} : memref<2x32x256xf32, #tpu.memory_space<vmem>>, vector<1x16x256xf32>,
    return
  }
  func.func @transform_0(%arg0: i32) -> (i32, i32, i32) {
    %c0_i32 = arith.constant 0 : i32
    %c0_i32_0 = arith.constant 0 : i32
    %c0_i32_1 = arith.constant 0 : i32
    return %arg0, %c0_i32, %c0_i32_0 : i32, i32, i32
  }
  func.func @transform_1(%arg0: i32) -> (i32, i32) {
    %c0_i32 = arith.constant 0 : i32
    %c0_i32_0 = arith.constant 0 : i32
    %c0_i32_1 = arith.constant 0 : i32
    return %c0_i32, %c0_i32_0 : i32, i32
  }
  func.func @transform_2(%arg0: i32) -> (i32, i32, i32) {
    %c0_i32 = arith.constant 0 : i32
    %c0_i32_0 = arith.constant 0 : i32
    %c0_i32_1 = arith.constant 0 : i32
    return %arg0, %c0_i32, %c0_i32_0 : i32, i32, i32
  }
}

</mosaic_0001>

<bundles_post_ra>
// kernel: make_dense_pallas.1
= control target key start
LH: loop header
LB: loop body
LE: loop exit
PB: predicated region body
PF: predicated region fallthrough
CT: control target
= control target key end

     0   :  { %v12_v0 = vlaneseq  ;;  %s1140_s25 = smov 127   ;;  %s1142_s6 = smov 112   ;;  %vm727_vm4 = vcmask 130048   ;;  %vm55_vm5 = vcmask 1039360   ;;  %vm90_vm6 = vcmask 1031168   ;;  %s1483_s0 = inlined_call_operand.vmem [shape: f32[2,16,290], index: 0, kind: input, shape index: {}]   ;;  %s1484_s1 = inlined_call_operand.vmem [shape: bf16[16,144], index: 1, kind: input, shape index: {}]   ;;  %s1485_s2 = inlined_call_operand.vmem [shape: f32[2,32,256], index: 2, kind: output, shape index: {}]  }
   0x1   :  { %v1166_v1 = vld [vmem:[%s1483_s0 + $0x38] sm:$0xff]  ;;  %v1171_v2 = vld [vmem:[%s1483_s0 + $0x50] sm:$0xff]  ;;  %v1176_v3 = vld [vmem:[%s1483_s0 + $0x8] sm:$0xff]  ;;  %s1143_s7 = smov 111   ;;  %s1144_s8 = smov 110   ;;  %vm131_vm11 = vcmask 916480  }
   0x2   :  { %v1180_v4 = vpack.c.bf16 %v1171_v2, %v1166_v1  ;;  %v1185_v5 = vld [vmem:[%s1483_s0 + $0x20] sm:$0xff]  ;;  %v1195_v7 = vld [vmem:[%s1483_s0 + $0x58] sm:$0xff]  ;;  %v1197_v8 = vand.u32 127, %v12_v0  ;;  %v1206_v10 = vld [vmem:[%s1483_s0 + $0x10] sm:$0xff]  ;;  %s1145_s9 = smov 96   ;;  %s1146_s10 = smov 95  }
   0x3   :  { %v1190_v6 = vld [vmem:[%s1483_s0 + $0x40] sm:$0xff]  ;;  %v1201_v9 = vpack.c.bf16 %v1185_v5, %v1176_v3  ;;  %v1211_v11 = vld [vmem:[%s1483_s0 + $0x28] sm:$0xff]  ;;  %v1227_v15 = vld [vmem:[%s1483_s0 + $0x30] sm:$0xff]  ;;  %v987_v26 = vpack.i.bf16 %v1206_v10, %v1176_v3  ;;  %v1002_v27 = vpack.i.bf16 %v1195_v7, %v1171_v2  ;;  %s1147_s11 = smov 94   ;;  %vm166_vm12 = vcmask 908288  }
   0x4   :  { %385 = vrot.lane.b32.xlu1 %v1180_v4, %s1140_s25  ;;  %v1216_v12 = vpack.c.bf16 %v1195_v7, %v1190_v6  ;;  %v1219_v13 = vadd.s32 128, %v1197_v8  ;;  %v45_v14 = vpack.c.bf16 %v1211_v11, %v1206_v10  ;;  %v1232_v16 = vld [vmem:[%s1483_s0 + $0x48] sm:$0xff]  ;;  %v1237_v17 = vld [vmem:[%s1483_s0] sm:$0xff]  ;;  %v1242_v18 = vld [vmem:[%s1483_s0 + $0x18] sm:$0xff]  ;;  %v15_v20 = vand.u32 15, %v1197_v8  ;;  %s1141_s0 = smov 126  }
   0x5   :  { %51 = vrot.lane.b32.xlu0 %v1201_v9, %s1140_s25  ;;  %v377_v21 = vpack.c.bf16 %v1232_v16, %v1227_v15  ;;  %v43_v22 = vpack.c.bf16 %v1242_v18, %v1237_v17  ;;  %v992_v25 = vpack.i.bf16 %v1211_v11, %v1185_v5  ;;  %v997_v28 = vpack.i.bf16 %v1190_v6, %v1166_v1  ;;  %v1139_v31 = vld [vmem:[%s1484_s1 + $0x4] ss:$8 sps:$4 sm:$0xff]  }
   0x6   :  { %v16_v19 = vand.u32 15, %v1219_v13  ;;  %vm17_vm1 = vcmp.ge.s32.totalorder %v15_v20, 1  ;;  %v1012_v29 = vpack.i.bf16 %v1232_v16, %v1227_v15  ;;  %v1007_v30 = vpack.i.bf16 %v1242_v18, %v1237_v17  ;;  %901 = vmatprep.mubr.msk.bf16.mxu0 %vm727_vm4, %v1139_v31  ;;  %902 = vmatprep.mubr.msk.bf16.mxu1 %vm727_vm4, %v1139_v31 }
   0x7   :  { %vm1265_vm3 = vmpackc.low %vm17_vm1, %vm17_vm1  ;;  %vm19_vm9 = vcmp.lt.s32.totalorder %v15_v20, 15  ;;  %vm197_vm13 = vcmask 900096   ;;  %vm238_vm14 = vcmask 785408   ;;  %vm273_vm15 = vcmask 777216  }
   0x8   :  { %387 = vrot.lane.b32.xlu1 %v1216_v12, %s1140_s25  ;;  %vm18_vm0 = vcmp.ge.s32.totalorder %v16_v19, 1  ;;  %vm20_vm7 = vcmp.lt.s32.totalorder %v16_v19, 15  ;;  %vm1342_vm10 = vmpackc.low %vm19_vm9, %vm19_vm9 }
   0x9   :  { %53 = vrot.lane.b32.xlu0 %v45_v14, %s1140_s25  ;;  %vm1255_vm2 = vmpackc.low %vm18_vm0, %vm18_vm0  ;;  %vm304_vm0 = vcmask 769024  }
   0xa   :  { %945 = vmatprep.subr.msk.bf16.mxu1 %vm1255_vm2, %v1180_v4  ;;  %909 = vmatprep.subr.msk.bf16.mxu0 %vm1255_vm2, %v1201_v9  ;;  %vm1328_vm8 = vmpackc.low %vm20_vm7, %vm20_vm7 }
   0xb   :  { %912 = vmatpush1.bf16.msk.msra.mxu0 %vm1265_vm3, %v43_v22  ;;  %948 = vmatpush1.bf16.msk.msra.mxu1 %vm1265_vm3, %v377_v21 }
   0xc   :  { %383 = vrot.lane.b32.xlu1 %v377_v21, %s1140_s25 }
   0xd   :  { %49 = vrot.lane.b32.xlu0 %v43_v22, %s1140_s25 }
  0x10   :  { %993 = vrot.lane.b32.xlu1 %v992_v25, %s1141_s0 }
  0x11   :  { %988 = vrot.lane.b32.xlu0 %v987_v26, %s1141_s0 }
  0x14   :  { %1003 = vrot.lane.b32.xlu1 %v1002_v27, %s1141_s0 }
  0x15   :  { %998 = vrot.lane.b32.xlu0 %v997_v28, %s1141_s0 }
  0x18   :  { %1013 = vrot.lane.b32.xlu1 %v1012_v29, %s1141_s0 }
  0x19   :  { %1008 = vrot.lane.b32.xlu0 %v1007_v30, %s1141_s0 }
  0x1c   :  { %1023 = vrot.lane.b32.xlu1 %v992_v25, %s1142_s6 }
  0x1d   :  { %1018 = vrot.lane.b32.xlu0 %v987_v26, %s1142_s6 }
  0x20   :  { %1033 = vrot.lane.b32.xlu1 %v1002_v27, %s1142_s6 }
  0x21   :  { %1028 = vrot.lane.b32.xlu0 %v997_v28, %s1142_s6 }
  0x24   :  { %1043 = vrot.lane.b32.xlu1 %v1012_v29, %s1142_s6 }
  0x25   :  { %1038 = vrot.lane.b32.xlu0 %v1007_v30, %s1142_s6 }
  0x28   :  { %164 = vrot.lane.b32.xlu1 %v45_v14, %s1143_s7 }
  0x29   :  { %162 = vrot.lane.b32.xlu0 %v1201_v9, %s1143_s7 }
  0x2c   :  { %491 = vrot.lane.b32.xlu1 %v1216_v12, %s1143_s7 }
  0x2d   :  { %489 = vrot.lane.b32.xlu0 %v1180_v4, %s1143_s7 }
  0x30   :  { %487 = vrot.lane.b32.xlu1 %v377_v21, %s1143_s7 }
  0x31   :  { %160 = vrot.lane.b32.xlu0 %v43_v22, %s1143_s7 }
  0x34   :  { %1053 = vrot.lane.b32.xlu1 %v992_v25, %s1144_s8 }
  0x35   :  { %1048 = vrot.lane.b32.xlu0 %v987_v26, %s1144_s8 }
  0x38   :  { %1063 = vrot.lane.b32.xlu1 %v1002_v27, %s1144_s8 }
  0x39   :  { %1058 = vrot.lane.b32.xlu0 %v997_v28, %s1144_s8 }
  0x3c   :  { %1073 = vrot.lane.b32.xlu1 %v1012_v29, %s1144_s8 }
  0x3d   :  { %1068 = vrot.lane.b32.xlu0 %v1007_v30, %s1144_s8 }
  0x40   :  { %1083 = vrot.lane.b32.xlu1 %v992_v25, %s1145_s9 }
  0x41   :  { %1078 = vrot.lane.b32.xlu0 %v987_v26, %s1145_s9 }
  0x44   :  { %1093 = vrot.lane.b32.xlu1 %v1002_v27, %s1145_s9 }
  0x45   :  { %1088 = vrot.lane.b32.xlu0 %v997_v28, %s1145_s9 }
  0x48   :  { %1103 = vrot.lane.b32.xlu1 %v1012_v29, %s1145_s9 }
  0x49   :  { %1098 = vrot.lane.b32.xlu0 %v1007_v30, %s1145_s9 }
  0x4c   :  { %271 = vrot.lane.b32.xlu1 %v45_v14, %s1146_s10 }
  0x4d   :  { %269 = vrot.lane.b32.xlu0 %v1201_v9, %s1146_s10 }
  0x50   :  { %595 = vrot.lane.b32.xlu1 %v1216_v12, %s1146_s10 }
  0x51   :  { %593 = vrot.lane.b32.xlu0 %v1180_v4, %s1146_s10 }
  0x54   :  { %591 = vrot.lane.b32.xlu1 %v377_v21, %s1146_s10 }
  0x55   :  { %267 = vrot.lane.b32.xlu0 %v43_v22, %s1146_s10 }
  0x58   :  { %1113 = vrot.lane.b32.xlu1 %v992_v25, %s1147_s11 }
  0x59   :  { %1108 = vrot.lane.b32.xlu0 %v987_v26, %s1147_s11 }
  0x5c   :  { %1123 = vrot.lane.b32.xlu1 %v1002_v27, %s1147_s11 }
  0x5d   :  { %1118 = vrot.lane.b32.xlu0 %v997_v28, %s1147_s11 }
  0x60   :  { %1133 = vrot.lane.b32.xlu1 %v1012_v29, %s1147_s11 }
  0x61   :  { %1128 = vrot.lane.b32.xlu0 %v1007_v30, %s1147_s11 }
  0x64   :  { %335 = vrot.lane.b32.xlu1 %v1176_v3, %s1143_s7 }
  0x65   :  { %333 = vrot.lane.b32.xlu0 %v1237_v17, %s1143_s7 }
  0x68   :  { %339 = vrot.lane.b32.xlu1 %v1242_v18, %s1143_s7 }
  0x69   :  { %337 = vrot.lane.b32.xlu0 %v1206_v10, %s1143_s7 }
  0x6c   :  { %343 = vrot.lane.b32.xlu1 %v1211_v11, %s1143_s7 }
  0x6d   :  { %341 = vrot.lane.b32.xlu0 %v1185_v5, %s1143_s7 }
  0x70   :  { %657 = vrot.lane.b32.xlu1 %v1166_v1, %s1143_s7 }
  0x71   :  { %655 = vrot.lane.b32.xlu0 %v1227_v15, %s1143_s7 }
  0x74   :  { %661 = vrot.lane.b32.xlu1 %v1232_v16, %s1143_s7 }
  0x75   :  { %659 = vrot.lane.b32.xlu0 %v1190_v6, %s1143_s7 }
  0x76   :  { %v386_v32 = vpop.permute.xlu1 %385 }
  0x77   :  { %v52_v33 = vpop.permute.xlu0 %51 }
  0x78   :  { %665 = vrot.lane.b32.xlu1 %v1195_v7, %s1143_s7 }
  0x79   :  { %663 = vrot.lane.b32.xlu0 %v1171_v2, %s1143_s7 }
  0x7a   :  { %v388_v34 = vpop.permute.xlu1 %387 }
  0x7b   :  { %v54_v35 = vpop.permute.xlu0 %53  ;;  %v390_v36 = vsel %vm55_vm5, %v386_v32, %v388_v34 }
  0x7c   :  { %v57_v37 = vsel %vm55_vm5, %v52_v33, %v54_v35  ;;  %776 = vmatprep.subr.bf16.mxu1 %v390_v36 }
  0x7d   :  { %733 = vmatprep.subr.bf16.mxu0 %v57_v37 }
  0x7e   :  { %v384_v38 = vpop.permute.xlu1 %383 }
  0x7f   :  { %v50_v39 = vpop.permute.xlu0 %49  ;;  %v389_v40 = vsel %vm55_vm5, %v384_v38, %v386_v32 }
  0x80   :  { %v56_v41 = vsel %vm55_vm5, %v50_v39, %v52_v33  ;;  %777 = vmatpush1.bf16.msra.mxu1 %v389_v40 }
  0x81   :  { %734 = vmatpush1.bf16.msra.mxu0 %v56_v41 }
  0x82   :  { %v994_v42 = vpop.permute.xlu1 %993 }
  0x83   :  { %v996_v43 = vunpack.i.h.bf16 %v994_v42  ;;  %v995_v44 = vunpack.i.l.bf16 %v994_v42  ;;  %v989_v45 = vpop.permute.xlu0 %988 }
  0x84   :  { %v991_v46 = vunpack.i.h.bf16 %v989_v45  ;;  %v990_v47 = vunpack.i.l.bf16 %v989_v45 }
  0x85   :  { %v94_v48 = vsel %vm90_vm6, %v995_v44, %v996_v43 }
  0x86   :  { %v92_v49 = vsel %vm90_vm6, %v990_v47, %v991_v46  ;;  %v1004_v50 = vpop.permute.xlu1 %1003 }
  0x87   :  { %v914_v52 = vpack.c.bf16 %v94_v48, %v92_v49  ;;  %v1006_v53 = vunpack.i.h.bf16 %v1004_v50  ;;  %v1005_v54 = vunpack.i.l.bf16 %v1004_v50  ;;  %v999_v55 = vpop.permute.xlu0 %998 }
  0x88   :  { %v1001_v56 = vunpack.i.h.bf16 %v999_v55  ;;  %v1000_v57 = vunpack.i.l.bf16 %v999_v55 }
  0x89   :  { %v422_v58 = vsel %vm90_vm6, %v1005_v54, %v1006_v53  ;;  %915 = vmatprep.subr.msk.bf16.mxu0 %vm1328_vm8, %v914_v52 }
  0x8a   :  { %v420_v59 = vsel %vm90_vm6, %v1000_v57, %v1001_v56  ;;  %v1014_v60 = vpop.permute.xlu1 %1013 }
  0x8b   :  { %v950_v61 = vpack.c.bf16 %v422_v58, %v420_v59  ;;  %v1016_v62 = vunpack.i.h.bf16 %v1014_v60  ;;  %v1015_v63 = vunpack.i.l.bf16 %v1014_v60  ;;  %v1009_v0 = vpop.permute.xlu0 %1008 }
  0x8c   :  { %v1011_v1 = vunpack.i.h.bf16 %v1009_v0  ;;  %v1010_v2 = vunpack.i.l.bf16 %v1009_v0 }
  0x8d   :  { %v419_v3 = vsel %vm90_vm6, %v1015_v63, %v1000_v57  ;;  %v421_v4 = vsel %vm90_vm6, %v1016_v62, %v1005_v54  ;;  %951 = vmatprep.subr.msk.bf16.mxu1 %vm1328_vm8, %v950_v61 }
  0x8e   :  { %v953_v6 = vpack.c.bf16 %v421_v4, %v419_v3  ;;  %v93_v7 = vsel %vm90_vm6, %v1011_v1, %v995_v44  ;;  %v91_v8 = vsel %vm90_vm6, %v1010_v2, %v990_v47  ;;  %v1024_v9 = vpop.permute.xlu1 %1023 }
  0x8f   :  { %v917_v10 = vpack.c.bf16 %v93_v7, %v91_v8  ;;  %v1026_v11 = vunpack.i.h.bf16 %v1024_v9  ;;  %v1025_v12 = vunpack.i.l.bf16 %v1024_v9  ;;  %v1019_v13 = vpop.permute.xlu0 %1018 }
  0x90   :  { %v1021_v14 = vunpack.i.h.bf16 %v1019_v13  ;;  %v1020_v15 = vunpack.i.l.bf16 %v1019_v13  ;;  %954 = vmatpush1.bf16.msk.msra.mxu1 %vm1342_vm10, %v953_v6 }
  0x91   :  { %v135_v16 = vsel %vm131_vm11, %v1025_v12, %v1026_v11  ;;  %918 = vmatpush1.bf16.msk.msra.mxu0 %vm1342_vm10, %v917_v10 }
  0x92   :  { %v133_v17 = vsel %vm131_vm11, %v1020_v15, %v1021_v14  ;;  %v1034_v18 = vpop.permute.xlu1 %1033 }
  0x93   :  { %v920_v19 = vpack.c.bf16 %v135_v16, %v133_v17  ;;  %v1036_v20 = vunpack.i.h.bf16 %v1034_v18  ;;  %v1035_v21 = vunpack.i.l.bf16 %v1034_v18  ;;  %v1029_v22 = vpop.permute.xlu0 %1028 }
  0x94   :  { %v1031_v25 = vunpack.i.h.bf16 %v1029_v22  ;;  %v1030_v26 = vunpack.i.l.bf16 %v1029_v22 }
  0x95   :  { %v462_v27 = vsel %vm131_vm11, %v1035_v21, %v1036_v20  ;;  %921 = vmatprep.subr.msk.bf16.mxu0 %vm1255_vm2, %v920_v19 }
  0x96   :  { %v460_v28 = vsel %vm131_vm11, %v1030_v26, %v1031_v25  ;;  %v1044_v29 = vpop.permute.xlu1 %1043 }
  0x97   :  { %v956_v30 = vpack.c.bf16 %v462_v27, %v460_v28  ;;  %v1046_v31 = vunpack.i.h.bf16 %v1044_v29  ;;  %v1045_v32 = vunpack.i.l.bf16 %v1044_v29  ;;  %v1039_v33 = vpop.permute.xlu0 %1038 }
  0x98   :  { %v1041_v34 = vunpack.i.h.bf16 %v1039_v33  ;;  %v1040_v35 = vunpack.i.l.bf16 %v1039_v33 }
  0x99   :  { %v459_v36 = vsel %vm131_vm11, %v1045_v32, %v1030_v26  ;;  %v461_v37 = vsel %vm131_vm11, %v1046_v31, %v1035_v21  ;;  %957 = vmatprep.subr.msk.bf16.mxu1 %vm1255_vm2, %v956_v30 }
  0x9a   :  { %v959_v38 = vpack.c.bf16 %v461_v37, %v459_v36  ;;  %v134_v39 = vsel %vm131_vm11, %v1041_v34, %v1025_v12  ;;  %v132_v40 = vsel %vm131_vm11, %v1040_v35, %v1020_v15  ;;  %v165_v41 = vpop.permute.xlu1 %164 }
  0x9b   :  { %v923_v42 = vpack.c.bf16 %v134_v39, %v132_v40  ;;  %v163_v43 = vpop.permute.xlu0 %162 }
  0x9c   :  { %960 = vmatpush1.bf16.msk.msra.mxu1 %vm1265_vm3, %v959_v38  ;;  %v168_v44 = vsel %vm166_vm12, %v163_v43, %v165_v41 }
  0x9d   :  { %924 = vmatpush1.bf16.msk.msra.mxu0 %vm1265_vm3, %v923_v42 }
  0x9e   :  { %739 = vmatprep.subr.bf16.mxu0 %v168_v44  ;;  %v492_v45 = vpop.permute.xlu1 %491 }
  0x9f   :  { %v490_v46 = vpop.permute.xlu0 %489 }
  0xa0   :  { %v494_v47 = vsel %vm166_vm12, %v490_v46, %v492_v45 }
  0xa1   :  { %782 = vmatprep.subr.bf16.mxu1 %v494_v47 }
  0xa2   :  { %v488_v48 = vpop.permute.xlu1 %487 }
  0xa3   :  { %v161_v49 = vpop.permute.xlu0 %160  ;;  %v493_v50 = vsel %vm166_vm12, %v488_v48, %v490_v46 }
  0xa4   :  { %v167_v52 = vsel %vm166_vm12, %v161_v49, %v163_v43  ;;  %783 = vmatpush1.bf16.msra.mxu1 %v493_v50 }
  0xa5   :  { %740 = vmatpush1.bf16.msra.mxu0 %v167_v52 }
  0xa6   :  { %v1054_v53 = vpop.permute.xlu1 %1053 }
  0xa7   :  { %v1056_v54 = vunpack.i.h.bf16 %v1054_v53  ;;  %v1055_v55 = vunpack.i.l.bf16 %v1054_v53  ;;  %v1049_v56 = vpop.permute.xlu0 %1048 }
  0xa8   :  { %v1051_v57 = vunpack.i.h.bf16 %v1049_v56  ;;  %v1050_v58 = vunpack.i.l.bf16 %v1049_v56 }
  0xa9   :  { %v201_v59 = vsel %vm197_vm13, %v1055_v55, %v1056_v54 }
  0xaa   :  { %v199_v60 = vsel %vm197_vm13, %v1050_v58, %v1051_v57  ;;  %v1064_v61 = vpop.permute.xlu1 %1063 }
  0xab   :  { %v926_v62 = vpack.c.bf16 %v201_v59, %v199_v60  ;;  %v1066_v63 = vunpack.i.h.bf16 %v1064_v61  ;;  %v1065_v0 = vunpack.i.l.bf16 %v1064_v61  ;;  %v1059_v1 = vpop.permute.xlu0 %1058 }
  0xac   :  { %v1061_v2 = vunpack.i.h.bf16 %v1059_v1  ;;  %v1060_v3 = vunpack.i.l.bf16 %v1059_v1 }
  0xad   :  { %v526_v4 = vsel %vm197_vm13, %v1065_v0, %v1066_v63  ;;  %927 = vmatprep.subr.msk.bf16.mxu0 %vm1328_vm8, %v926_v62 }
  0xae   :  { %v524_v6 = vsel %vm197_vm13, %v1060_v3, %v1061_v2  ;;  %v1074_v7 = vpop.permute.xlu1 %1073 }
  0xaf   :  { %v962_v8 = vpack.c.bf16 %v526_v4, %v524_v6  ;;  %v1076_v9 = vunpack.i.h.bf16 %v1074_v7  ;;  %v1075_v10 = vunpack.i.l.bf16 %v1074_v7  ;;  %v1069_v11 = vpop.permute.xlu0 %1068 }
  0xb0   :  { %v1071_v12 = vunpack.i.h.bf16 %v1069_v11  ;;  %v1070_v13 = vunpack.i.l.bf16 %v1069_v11 }
  0xb1   :  { %v523_v14 = vsel %vm197_vm13, %v1075_v10, %v1060_v3  ;;  %v525_v15 = vsel %vm197_vm13, %v1076_v9, %v1065_v0  ;;  %963 = vmatprep.subr.msk.bf16.mxu1 %vm1328_vm8, %v962_v8 }
  0xb2   :  { %v965_v16 = vpack.c.bf16 %v525_v15, %v523_v14  ;;  %v200_v17 = vsel %vm197_vm13, %v1071_v12, %v1055_v55  ;;  %v198_v18 = vsel %vm197_vm13, %v1070_v13, %v1050_v58  ;;  %v1084_v19 = vpop.permute.xlu1 %1083 }
  0xb3   :  { %v929_v20 = vpack.c.bf16 %v200_v17, %v198_v18  ;;  %v1086_v21 = vunpack.i.h.bf16 %v1084_v19  ;;  %v1085_v22 = vunpack.i.l.bf16 %v1084_v19  ;;  %v1079_v25 = vpop.permute.xlu0 %1078 }
  0xb4   :  { %v1081_v26 = vunpack.i.h.bf16 %v1079_v25  ;;  %v1080_v27 = vunpack.i.l.bf16 %v1079_v25  ;;  %966 = vmatpush1.bf16.msk.msra.mxu1 %vm1342_vm10, %v965_v16 }
  0xb5   :  { %v242_v28 = vsel %vm238_vm14, %v1085_v22, %v1086_v21  ;;  %930 = vmatpush1.bf16.msk.msra.mxu0 %vm1342_vm10, %v929_v20 }
  0xb6   :  { %v240_v29 = vsel %vm238_vm14, %v1080_v27, %v1081_v26  ;;  %v1094_v30 = vpop.permute.xlu1 %1093 }
  0xb7   :  { %v932_v31 = vpack.c.bf16 %v242_v28, %v240_v29  ;;  %v1096_v32 = vunpack.i.h.bf16 %v1094_v30  ;;  %v1095_v33 = vunpack.i.l.bf16 %v1094_v30  ;;  %v1089_v34 = vpop.permute.xlu0 %1088 }
  0xb8   :  { %v1091_v35 = vunpack.i.h.bf16 %v1089_v34  ;;  %v1090_v36 = vunpack.i.l.bf16 %v1089_v34 }
  0xb9   :  { %v566_v37 = vsel %vm238_vm14, %v1095_v33, %v1096_v32  ;;  %933 = vmatprep.subr.msk.bf16.mxu0 %vm1255_vm2, %v932_v31  ;;  %v1137_v31 = vld [vmem:[%s1484_s1] ss:$8 sps:$4 sm:$0xff]  }
  0xba   :  { %v564_v38 = vsel %vm238_vm14, %v1090_v36, %v1091_v35  ;;  %v1104_v39 = vpop.permute.xlu1 %1103 }
  0xbb   :  { %v968_v40 = vpack.c.bf16 %v566_v37, %v564_v38  ;;  %v1106_v41 = vunpack.i.h.bf16 %v1104_v39  ;;  %v1105_v42 = vunpack.i.l.bf16 %v1104_v39  ;;  %v1099_v43 = vpop.permute.xlu0 %1098 }
  0xbc   :  { %v1101_v44 = vunpack.i.h.bf16 %v1099_v43  ;;  %v1100_v45 = vunpack.i.l.bf16 %v1099_v43 }
  0xbd   :  { %v563_v46 = vsel %vm238_vm14, %v1105_v42, %v1090_v36  ;;  %v565_v47 = vsel %vm238_vm14, %v1106_v41, %v1095_v33  ;;  %969 = vmatprep.subr.msk.bf16.mxu1 %vm1255_vm2, %v968_v40 }
  0xbe   :  { %v971_v48 = vpack.c.bf16 %v565_v47, %v563_v46  ;;  %v241_v49 = vsel %vm238_vm14, %v1101_v44, %v1085_v22  ;;  %v239_v50 = vsel %vm238_vm14, %v1100_v45, %v1080_v27  ;;  %v272_v52 = vpop.permute.xlu1 %271 }
  0xbf   :  { %v935_v53 = vpack.c.bf16 %v241_v49, %v239_v50  ;;  %v270_v54 = vpop.permute.xlu0 %269 }
  0xc0   :  { %972 = vmatpush1.bf16.msk.msra.mxu1 %vm1265_vm3, %v971_v48  ;;  %v275_v55 = vsel %vm273_vm15, %v270_v54, %v272_v52 }
  0xc1   :  { %936 = vmatpush1.bf16.msk.msra.mxu0 %vm1265_vm3, %v935_v53 }
  0xc2   :  { %745 = vmatprep.subr.bf16.mxu0 %v275_v55  ;;  %v596_v23 = vpop.permute.xlu1 %595 }
  0xc3   :  { %v594_v56 = vpop.permute.xlu0 %593 }
  0xc4   :  { %v598_v57 = vsel %vm273_vm15, %v594_v56, %v596_v23 }
  0xc5   :  { %788 = vmatprep.subr.bf16.mxu1 %v598_v57 }
  0xc6   :  { %v592_v58 = vpop.permute.xlu1 %591 }
  0xc7   :  { %v268_v59 = vpop.permute.xlu0 %267  ;;  %v597_v60 = vsel %vm273_vm15, %v592_v58, %v594_v56 }
  0xc8   :  { %v274_v61 = vsel %vm273_vm15, %v268_v59, %v270_v54  ;;  %789 = vmatpush1.bf16.msra.mxu1 %v597_v60 }
  0xc9   :  { %746 = vmatpush1.bf16.msra.mxu0 %v274_v61 }
  0xca   :  { %v1114_v62 = vpop.permute.xlu1 %1113 }
  0xcb   :  { %v1116_v63 = vunpack.i.h.bf16 %v1114_v62  ;;  %v1115_v0 = vunpack.i.l.bf16 %v1114_v62  ;;  %v1109_v24 = vpop.permute.xlu0 %1108 }
  0xcc   :  { %v1111_v1 = vunpack.i.h.bf16 %v1109_v24  ;;  %v1110_v2 = vunpack.i.l.bf16 %v1109_v24 }
  0xcd   :  { %v308_v3 = vsel %vm304_vm0, %v1115_v0, %v1116_v63 }
  0xce   :  { %v306_v4 = vsel %vm304_vm0, %v1110_v2, %v1111_v1  ;;  %v1124_v6 = vpop.permute.xlu1 %1123 }
  0xcf   :  { %v938_v7 = vpack.c.bf16 %v308_v3, %v306_v4  ;;  %v1126_v8 = vunpack.i.h.bf16 %v1124_v6  ;;  %v1125_v9 = vunpack.i.l.bf16 %v1124_v6  ;;  %v1119_v10 = vpop.permute.xlu0 %1118 }
  0xd0   :  { %v1121_v11 = vunpack.i.h.bf16 %v1119_v10  ;;  %v1120_v12 = vunpack.i.l.bf16 %v1119_v10 }
  0xd1   :  { %v630_v13 = vsel %vm304_vm0, %v1125_v9, %v1126_v8  ;;  %939 = vmatprep.subr.msk.bf16.mxu0 %vm1328_vm8, %v938_v7 }
  0xd2   :  { %v628_v14 = vsel %vm304_vm0, %v1120_v12, %v1121_v11  ;;  %v1134_v15 = vpop.permute.xlu1 %1133 }
  0xd3   :  { %v974_v16 = vpack.c.bf16 %v630_v13, %v628_v14  ;;  %v1136_v17 = vunpack.i.h.bf16 %v1134_v15  ;;  %v1135_v18 = vunpack.i.l.bf16 %v1134_v15  ;;  %v1129_v19 = vpop.permute.xlu0 %1128 }
  0xd4   :  { %v1131_v20 = vunpack.i.h.bf16 %v1129_v19  ;;  %v1130_v21 = vunpack.i.l.bf16 %v1129_v19 }
  0xd5   :  { %v627_v22 = vsel %vm304_vm0, %v1135_v18, %v1120_v12  ;;  %v629_v25 = vsel %vm304_vm0, %v1136_v17, %v1125_v9  ;;  %975 = vmatprep.subr.msk.bf16.mxu1 %vm1328_vm8, %v974_v16 }
  0xd6   :  { %v977_v26 = vpack.c.bf16 %v629_v25, %v627_v22  ;;  %v307_v27 = vsel %vm304_vm0, %v1131_v20, %v1115_v0  ;;  %v305_v28 = vsel %vm304_vm0, %v1130_v21, %v1110_v2  ;;  %v336_v29 = vpop.permute.xlu1 %335 }
  0xd7   :  { %v941_v30 = vpack.c.bf16 %v307_v27, %v305_v28  ;;  %v334_v32 = vpop.permute.xlu0 %333 }
  0xd8   :  { %978 = vmatpush1.bf16.msk.msra.mxu1 %vm1342_vm10, %v977_v26  ;;  %v346_v33 = vsel %vm166_vm12, %v334_v32, %v336_v29 }
  0xd9   :  { %942 = vmatpush1.bf16.msk.msra.mxu0 %vm1342_vm10, %v941_v30  ;;  %354 = vst [vmem:[%s1485_s2] sm:$0xff] %v346_v33 }
  0xda   :  { %v340_v51 = vpop.permute.xlu1 %339 }
  0xdb   :  { %807 = vmatmul.mubr.bf16.vlgmr.msra.gmra.mrb[0].mxu1 %v1137_v31  ;;  %v338_v34 = vpop.permute.xlu0 %337 }
  0xdc   :  { %764 = vmatmul.mubr.bf16.vlgmr.msra.gmra.mrb[0].mxu0 %v1137_v31  ;;  %v347_v35 = vsel %vm166_vm12, %v336_v29, %v338_v34 }
  0xdd   :  { %355 = vst [vmem:[%s1485_s2 + $0x8] sm:$0xff] %v347_v35 }
  0xde   :  { %v344_v36 = vpop.permute.xlu1 %343 }
  0xdf   :  { %v342_v37 = vpop.permute.xlu0 %341 }
  0xe0   :  { %v348_v38 = vsel %vm166_vm12, %v340_v51, %v342_v37  ;;  %v349_v5 = vsel %vm166_vm12, %v342_v37, %v344_v36 }
  0xe1   :  { %356 = vst [vmem:[%s1485_s2 + $0x10] sm:$0xff] %v348_v38  ;;  %357 = vst [vmem:[%s1485_s2 + $0x18] sm:$0xff] %v349_v5 }
  0xe2   :  { %v658_v39 = vpop.permute.xlu1 %657 }
  0xe3   :  { %v656_v40 = vpop.permute.xlu0 %655 }
  0xe4   :  { %v667_v41 = vsel %vm166_vm12, %v656_v40, %v658_v39 }
  0xe5   :  { %895 = vst [vmem:[%s1485_s2 + $0x40] sm:$0xff] %v667_v41 }
  0xe6   :  { %v662_v44 = vpop.permute.xlu1 %661 }
  0xe7   :  { %v660_v42 = vpop.permute.xlu0 %659 }
  0xe8   :  { %v668_v43 = vsel %vm166_vm12, %v658_v39, %v660_v42 }
  0xe9   :  { %896 = vst [vmem:[%s1485_s2 + $0x48] sm:$0xff] %v668_v43 }
  0xea   :  { %v666_v47 = vpop.permute.xlu1 %665 }
  0xeb   :  { %v664_v45 = vpop.permute.xlu0 %663 }
  0xec   :  { %v669_v46 = vsel %vm166_vm12, %v662_v44, %v664_v45  ;;  %v670_v48 = vsel %vm166_vm12, %v664_v45, %v666_v47 }
  0xed   :  { %897 = vst [vmem:[%s1485_s2 + $0x50] sm:$0xff] %v669_v46  ;;  %898 = vst [vmem:[%s1485_s2 + $0x58] sm:$0xff] %v670_v48 }
 0x1ae   :  { %v808_v49 = vpop.f32.mrb[0].mxu1 }
 0x1af   :  { %v765_v50 = vpop.f32.mrb[0].mxu0  ;;  %v819_v52 = vmax.f32 %v808_v49, 0.0  ;;  %v810_v53 = vpop.f32.mrb[1].mxu1 }
 0x1b0   :  { %v817_v54 = vmax.f32 %v765_v50, 0.0  ;;  %v767_v55 = vpop.f32.mrb[1].mxu0  ;;  %v820_v23 = vmax.f32 %v810_v53, 0.0  ;;  %v812_v56 = vpop.f32.mrb[2].mxu1 }
 0x1b1   :  { %903 = vst [vmem:[%s1485_s2 + $0x60] sm:$0xff] %v819_v52  ;;  %v818_v57 = vmax.f32 %v767_v55, 0.0  ;;  %v769_v58 = vpop.f32.mrb[2].mxu0  ;;  %v823_v59 = vmax.f32 %v812_v56, 0.0  ;;  %v814_v60 = vpop.f32.mrb[3].mxu1 }
 0x1b2   :  { %825 = vst [vmem:[%s1485_s2 + $0x20] sm:$0xff] %v817_v54  ;;  %904 = vst [vmem:[%s1485_s2 + $0x68] sm:$0xff] %v820_v23  ;;  %v821_v61 = vmax.f32 %v769_v58, 0.0  ;;  %v771_v62 = vpop.f32.mrb[3].mxu0  ;;  %v824_v63 = vmax.f32 %v814_v60, 0.0 }
 0x1b3   :  { %826 = vst [vmem:[%s1485_s2 + $0x28] sm:$0xff] %v818_v57  ;;  %905 = vst [vmem:[%s1485_s2 + $0x70] sm:$0xff] %v823_v59  ;;  %v822_v0 = vmax.f32 %v771_v62, 0.0 }
 0x1b4   :  { %827 = vst [vmem:[%s1485_s2 + $0x30] sm:$0xff] %v821_v61  ;;  %906 = vst [vmem:[%s1485_s2 + $0x78] sm:$0xff] %v824_v63 }
 0x1b5   :  { %828 = vst [vmem:[%s1485_s2 + $0x38] sm:$0xff] %v822_v0 }

</bundles_post_ra>
